<compile_context>
chip_gen: v7x
topology: tpu7x:2x2x1
jax: 0.10.0
libtpu: 0.0.40
codegen_flags: <defaults>
</compile_context>

<pallas_src>
import math

import jax
import jax.numpy as jnp
from jax.experimental import pallas as pl
from jax.experimental.pallas import tpu as pltpu


def _round_up(x, m):
    return ((x + m - 1) // m) * m


def _vmem_capacity_bytes():
    """Per-TensorCore VMEM for the attached TPU generation (conservative)."""
    try:
        kind = jax.devices()[0].device_kind.lower()
    except Exception:
        return 64 * 1024 * 1024
    if "v7" in kind:
        return 64 * 1024 * 1024            # v7x: 64 MiB per TensorCore
    if "v2" in kind or "v3" in kind:
        return 16 * 1024 * 1024
    return 128 * 1024 * 1024               # v4 / v5e / v5p / v6e


def _se_kernel(x_ref, w1t_ref, w2t_ref, o_ref):
    # x_ref  : (tm, C_pad)  tile of flattened input rows (f32 or bf16)
    # w1t_ref: (C_pad, H)   W1^T, channel-padded (bf16 by default)
    # w2t_ref: (H, C_pad)   W2^T, channel-padded (bf16 by default)
    x = x_ref[...]

    # hidden = relu(x @ W1^T) -- bf16 MXU operands, f32 accumulation.
    h = jnp.dot(x.astype(w1t_ref.dtype), w1t_ref[...],
                preferred_element_type=jnp.float32)
    h = jnp.maximum(h, 0.0)

    # logits = h @ W2^T -- bf16 MXU operands, f32 accumulation.
    s = jnp.dot(h.astype(w2t_ref.dtype), w2t_ref[...],
                preferred_element_type=jnp.float32)

    # sigmoid on the EUP slot: exp + approximate reciprocal (free filler under
    # the DMA/MXU shadow; keeps the VALU slots clear).
    gate = pl.reciprocal(1.0 + jnp.exp(-s), approx=True)

    if x.dtype == jnp.float32:
        o_ref[...] = (x * gate).astype(o_ref.dtype)
    else:
        # bf16 streaming: no f32 materialization of the x tile; v6e/v7x VALU
        # is bf16-native (v5e upcasts internally, still correct).
        o_ref[...] = (x * gate.astype(x.dtype)).astype(o_ref.dtype)


def prepare_se_weights(w1, w2, *, dtype=jnp.bfloat16, c_pad=None):
    """Hoist transposes / channel padding / dtype cast out of the per-call path.

    w1: (H, C), w2: (C, H) in PyTorch nn.Linear weight layout.
    Returns (w1t, w2t) with shapes (C_pad, H), (H, C_pad), C_pad = round_up(C,
    128), so the kernel's output is lane-dense.  Default dtype is bf16
    (MXU-native on v5e/v6e/v7x); pass dtype=jnp.float32 for exact weights.
    Zero padding keeps semantics exact (padded channels produce out == 0).
    """
    H, C = w1.shape
    assert w2.shape == (C, H)
    if c_pad is None:
        c_pad = _round_up(C, 128)
    w1t = w1.T.astype(dtype)   # (C, H)
    w2t = w2.T.astype(dtype)   # (H, C)
    if c_pad != C:
        w1t = jnp.pad(w1t, ((0, c_pad - C), (0, 0)))
        w2t = jnp.pad(w2t, ((0, 0), (0, c_pad - C)))
    return w1t, w2t


def se_layer(x, w1t, w2t, *, tm=None):
    """SELayer forward: out = x * sigmoid(relu(x @ W1^T) @ W2^T).

    x: (..., C).  (w1t, w2t) come from prepare_se_weights: (C_pad, H), (H, C_pad).
    x / out stream at their native dtype (f32 or bf16); matmul accumulation is f32.
    """
    orig_shape = x.shape
    C = orig_shape[-1]
    C_pad, H = w1t.shape
    assert w2t.shape == (H, C_pad) and C_pad >= C
    M = math.prod(orig_shape[:-1])

    x_item = jnp.dtype(x.dtype).itemsize
    w_item = jnp.dtype(w1t.dtype).itemsize

    vmem_cap = _vmem_capacity_bytes()
    budget = (vmem_cap * 3) // 4              # <=48 MiB on v7x, <=96 MiB on v5e/v6e
    slack = 2 * 1024 * 1024
    w_bytes = 2 * 2 * C_pad * H * w_item      # both weights, double-buffered
    # Per-row VMEM: in+out tiles double-buffered + live intermediates
    # (bf16 MXU copy of x, f32 logits/gate/product, small h buffers).
    per_row = 4 * C_pad * x_item + 3 * 4 * C_pad + 4 * 4 * H

    # --- row-tile sizing -----------------------------------------------------
    if tm is None:
        avail = max(budget - w_bytes - slack, per_row * 8)   # 8-row floor
        tm = avail // per_row
        # Generation-aware cap: bigger tiles on 128 MiB-VMEM chips.
        tm = min(tm, 2048 if vmem_cap <= 64 * 1024 * 1024 else 4096)
        # Keep >= 4 grid steps when there is enough work (megacore sharding on
        # v7x's 2 TCs + DMA/compute pipelining).
        if M >= 4 * 256:
            tm = min(tm, max(256, _round_up(pl.cdiv(M, 4), 256)))
        tm = (tm // 256) * 256 if tm >= 256 else max((tm // 8) * 8, 8)
    tm = int(tm)
    if tm >= M:
        tm = M                                 # single full-extent block (legal)
    elif tm % 8 != 0:
        tm = max((tm // 8) * 8, 8)
    grid_m = pl.cdiv(M, tm)                    # partial last block masked by Pallas

    # Only pad/copy the channel dim when it is not already lane-dense.
    x2 = x.reshape(M, C)
    if C_pad != C:
        x2 = jnp.pad(x2, ((0, 0), (0, C_pad - C)))

    # VMEM request: tiles + weights + live intermediates; never the full
    # physical capacity (v7x only has 64 MiB per core).
    needed = (4 * tm * C_pad * x_item
              + w_bytes
              + 3 * 4 * tm * C_pad + 4 * 4 * tm * H
              + slack)
    vmem_limit = int(min(max(needed, 32 * 1024 * 1024), budget))

    out = pl.pallas_call(
        _se_kernel,
        out_shape=jax.ShapeDtypeStruct((M, C_pad), x.dtype),
        grid_spec=pltpu.PrefetchScalarGridSpec(
            num_scalar_prefetch=0,
            grid=(grid_m,),
            in_specs=[
                pl.BlockSpec((tm, C_pad), lambda i: (i, 0)),
                pl.BlockSpec((C_pad, H), lambda i: (0, 0)),
                pl.BlockSpec((H, C_pad), lambda i: (0, 0)),
            ],
            out_specs=pl.BlockSpec((tm, C_pad), lambda i: (i, 0)),
        ),
        compiler_params=pltpu.CompilerParams(
            dimension_semantics=("parallel",),   # shards across v7x's 2 TCs
            vmem_limit_bytes=vmem_limit,
        ),
    )(x2, w1t, w2t)

    if C_pad != C:
        out = out[:, :C]
    return out.reshape(orig_shape)


def se_layer_ref(x, w1, w2):
    h = jnp.maximum(x @ w1.T, 0.0)
    y = jax.nn.sigmoid(h @ w2.T)
    return x * y


if __name__ == "__main__":
    # Lane-dense channel count (multiple of 128); small leading dims.
    B, N, C, reduction = 2, 8, 128, 16
    H = C // reduction  # 8

    key = jax.random.PRNGKey(0)
    kx, k1, k2 = jax.random.split(key, 3)

    x = jax.random.normal(kx, (B, N, C), dtype=jnp.float32)
    # Deterministic synthetic weights in PyTorch nn.Linear layout.
    w1 = jax.random.normal(k1, (H, C), dtype=jnp.float32) * 0.1  # Linear(C, C//r)
    w2 = jax.random.normal(k2, (C, H), dtype=jnp.float32) * 0.1  # Linear(C//r, C)

    # Hoisted once (init-time): transpose + channel pad + bf16 cast.
    w1t, w2t = prepare_se_weights(w1, w2)

    ref = se_layer_ref(x, w1, w2)

    # f32 streaming path (bf16 MXU operands, f32 accumulation).
    out = jax.block_until_ready(se_layer(x, w1t, w2t))
    assert out.shape == x.shape
    assert jnp.allclose(out, ref, atol=3e-2, rtol=3e-2), \
        f"f32-stream mismatch vs reference: {jnp.max(jnp.abs(out - ref))}"

    # bf16 streaming path (halves HBM bytes; f32 accumulation inside kernel).
    x_bf16 = x.astype(jnp.bfloat16)
    out_bf16 = jax.block_until_ready(se_layer(x_bf16, w1t, w2t))
    assert out_bf16.dtype == jnp.bfloat16
    ref_bf16 = se_layer_ref(x_bf16.astype(jnp.float32), w1, w2)
    assert jnp.allclose(out_bf16.astype(jnp.float32), ref_bf16, atol=6e-2, rtol=6e-2), \
        "bf16-stream mismatch vs reference"

    print("KERNEL_OK")
</pallas_src>

<mosaic_0001>
module attributes {stable_mosaic.version = 11 : i64} {
  func.func @_se_kernel(%arg0: i32, %arg1: memref<16x128xf32, #tpu.memory_space<vmem>>, %arg2: memref<128x8xbf16, #tpu.memory_space<vmem>>, %arg3: memref<8x128xbf16, #tpu.memory_space<vmem>>, %arg4: memref<16x128xf32, #tpu.memory_space<vmem>>) attributes {dimension_semantics = [#tpu.dimension_semantics<parallel>], iteration_bounds = array<i64: 1>, scalar_prefetch = 0 : i64, scratch_operands = 0 : i64, tpu.core_type = #tpu.core_type<tc>, window_params = [{transform_indices = @transform_0, window_bounds = array<i64: 16, 128>}, {pipeline_mode = #tpu.pipeline_mode<synchronous>, transform_indices = @transform_1, window_bounds = array<i64: 128, 8>}, {pipeline_mode = #tpu.pipeline_mode<synchronous>, transform_indices = @transform_2, window_bounds = array<i64: 8, 128>}, {transform_indices = @transform_3, window_bounds = array<i64: 16, 128>}]} {
    %c0 = arith.constant 0 : index
    %c0_0 = arith.constant 0 : index
    %0 = vector.load %arg1[%c0, %c0_0] : memref<16x128xf32, #tpu.memory_space<vmem>>, vector<16x128xf32>
    %1 = arith.truncf %0 : vector<16x128xf32> to vector<16x128xbf16>
    %c0_1 = arith.constant 0 : index
    %c0_2 = arith.constant 0 : index
    %2 = vector.load %arg2[%c0_1, %c0_2] : memref<128x8xbf16, #tpu.memory_space<vmem>>, vector<128x8xbf16>
    %cst = arith.constant dense<0.000000e+00> : vector<16x8xf32>
    %3 = tpu.matmul %1, %2, %cst {dimension_numbers = #tpu.dot_dimension_numbers<[1], [0], [0], [1], [0, 0, 1, 1], [], []>} : vector<16x128xbf16>, vector<128x8xbf16>, vector<16x8xf32> -> vector<16x8xf32>
    %cst_3 = arith.constant 0.000000e+00 : f32
    %4 = vector.broadcast %cst_3 : f32 to vector<16x8xf32>
    %5 = arith.maximumf %3, %4 : vector<16x8xf32>
    %6 = arith.truncf %5 : vector<16x8xf32> to vector<16x8xbf16>
    %c0_4 = arith.constant 0 : index
    %c0_5 = arith.constant 0 : index
    %7 = vector.load %arg3[%c0_4, %c0_5] : memref<8x128xbf16, #tpu.memory_space<vmem>>, vector<8x128xbf16>
    %cst_6 = arith.constant dense<0.000000e+00> : vector<16x128xf32>
    %8 = tpu.matmul %6, %7, %cst_6 {dimension_numbers = #tpu.dot_dimension_numbers<[1], [0], [0], [1], [0, 0, 1, 1], [], []>} : vector<16x8xbf16>, vector<8x128xbf16>, vector<16x128xf32> -> vector<16x128xf32>
    %cst_7 = arith.constant 0.000000e+00 : f32
    %9 = vector.broadcast %cst_7 : f32 to vector<16x128xf32>
    %10 = arith.subf %9, %8 : vector<16x128xf32>
    %11 = math.exp %10 : vector<16x128xf32>
    %cst_8 = arith.constant 1.000000e+00 : f32
    %12 = vector.broadcast %cst_8 : f32 to vector<16x128xf32>
    %13 = arith.addf %12, %11 : vector<16x128xf32>
    %14 = tpu.reciprocal %13 {approx = true} : vector<16x128xf32> -> vector<16x128xf32>
    %15 = arith.mulf %0, %14 : vector<16x128xf32>
    %c0_9 = arith.constant 0 : index
    %c0_10 = arith.constant 0 : index
    %16 = vector.load %arg4[%c0_9, %c0_10] : memref<16x128xf32, #tpu.memory_space<vmem>>, vector<16x128xf32>
    tpu.vector_store %arg4[%c0_9, %c0_10], %15 {strides = array<i32>} : memref<16x128xf32, #tpu.memory_space<vmem>>, vector<16x128xf32>,
    return
  }
  func.func @transform_0(%arg0: i32) -> (i32, i32) {
    %c0_i32 = arith.constant 0 : i32
    %c0_i32_0 = arith.constant 0 : i32
    return %arg0, %c0_i32 : i32, i32
  }
  func.func @transform_1(%arg0: i32) -> (i32, i32) {
    %c0_i32 = arith.constant 0 : i32
    %c0_i32_0 = arith.constant 0 : i32
    %c0_i32_1 = arith.constant 0 : i32
    return %c0_i32, %c0_i32_0 : i32, i32
  }
  func.func @transform_2(%arg0: i32) -> (i32, i32) {
    %c0_i32 = arith.constant 0 : i32
    %c0_i32_0 = arith.constant 0 : i32
    %c0_i32_1 = arith.constant 0 : i32
    return %c0_i32, %c0_i32_0 : i32, i32
  }
  func.func @transform_3(%arg0: i32) -> (i32, i32) {
    %c0_i32 = arith.constant 0 : i32
    %c0_i32_0 = arith.constant 0 : i32
    return %arg0, %c0_i32 : i32, i32
  }
}

</mosaic_0001>

<bundles_post_ra>
// kernel: tpu_custom_call.1
= control target key start
LH: loop header
LB: loop body
LE: loop exit
PB: predicated region body
PF: predicated region fallthrough
CT: control target
= control target key end

     0   :  { %v298_v1 = vmov 0.0   ;;  %vm299_vm0 = vmmov 0   ;;  %s368_s0 = inlined_call_operand.vmem [shape: f32[16,128], index: 0, kind: input, shape index: {}]   ;;  %s369_s1 = inlined_call_operand.vmem [shape: bf16[128,8], index: 1, kind: input, shape index: {}]   ;;  %s370_s2 = inlined_call_operand.vmem [shape: bf16[8,128], index: 2, kind: input, shape index: {}]   ;;  %s371_s3 = inlined_call_operand.hbm [shape: f32[16,128], index: 3, kind: output, shape index: {}]  }
   0x1   :  { %v258_v0 = vld [vmem:[%s369_s1] sm:$0xff]   ;;  %227 = vmatprep.subr.bf16.mxu0 %v298_v1  ;;  %247 = vmatprep.subr.bf16.mxu1 %v298_v1  ;;  %v259_v2 = vld [vmem:[%s369_s1 + $0x8] sm:$0xff]   ;;  %v260_v3 = vld [vmem:[%s369_s1 + $0x10] sm:$0xff]  }
   0x2   :  { %228 = vmatpush3.bf16.msra.mxu0 %v258_v0  ;;  %243 = vmatprep.mubr.msk.bf16.mxu0 %vm299_vm0, %v298_v1 }
   0x3   :  { %229 = vmatprep.subr.bf16.mxu0 %v298_v1  ;;  %249 = vmatprep.mubr.msk.bf16.mxu1 %vm299_vm0, %v298_v1 }
   0x6   :  { %230 = vmatpush3.bf16.msra.mxu0 %v259_v2 }
   0x7   :  { %231 = vmatprep.subr.bf16.mxu0 %v298_v1 }
   0x8   :  { %8 = vsyncpa [#allocation3], 0  ;;  %v261_v4 = vld [vmem:[%s369_s1 + $0x18] sm:$0xff]   ;;  %v262_v5 = vld [vmem:[%s369_s1 + $0x20] sm:$0xff]   ;;  %vm132_vm1 = vcmask 1043456   ;;  %vm128_vm2 = vcmask 64512  }
   0x9   :  { %v263_v6 = vld [vmem:[%s369_s1 + $0x28] sm:$0xff]   ;;  %v264_v7 = vld [vmem:[%s369_s1 + $0x30] sm:$0xff]   ;;  %v265_v8 = vld [vmem:[%s369_s1 + $0x38] sm:$0xff]  }
   0xa   :  { %232 = vmatpush3.bf16.msra.mxu0 %v260_v3  ;;  %v16_v9 = vld [vmem:[%s368_s0] sm:$0xff]  ;;  %v17_v10 = vld [vmem:[%s368_s0 + $0x8] sm:$0xff]  ;;  %s300_s0 = smov [#allocation2]  }
   0xb   :  { %233 = vmatprep.subr.bf16.mxu0 %v298_v1  ;;  %v18_v11 = vpack.c.bf16 %v17_v10, %v16_v9  ;;  %v127_v12 = vld [vmem:[%s370_s2] sm:$0xf]  ;;  %s196_s1 = sshll.u32 %s300_s0, 4  ;;  %s197_s1 = int_to_ptr.vmem [resolvable:$true] %s196_s1 }
   0xc   :  { %v134_v13 = vsel %vm132_vm1, %v127_v12, 0  ;;  %s274_s2 = scalar_lea.vmem %s197_s1, 256  ;;  %p279_p1 = scmp.lt.s32.totalorder %s197_s1, %s197_s1 }
   0xd   :  { %248 = vmatpush3.bf16.msra.mxu1 %v134_v13  ;;  %p275_p0 = scmp.ne.s32.totalorder %s197_s1, %s274_s2  ;;  %p280_p2 = scmp.lt.s32.totalorder %s274_s2, %s274_s2 }
   0xe   :  { %234 = vmatpush3.bf16.msra.mxu0 %v261_v4 }
   0xf   :  { %235 = vmatprep.subr.bf16.mxu0 %v298_v1  ;;  %p281_p3 = por %p280_p2, %p279_p1 }
  0x11   :  { %p282_p4 = pnand %p281_p3, %p275_p0 }
  0x12   :  { %236 = vmatpush3.bf16.msra.mxu0 %v262_v5 }
  0x13   :  { %237 = vmatprep.subr.bf16.mxu0 %v298_v1 }
  0x16   :  { %238 = vmatpush3.bf16.msra.mxu0 %v263_v6 }
  0x17   :  { %239 = vmatprep.subr.bf16.mxu0 %v298_v1 }
  0x1a   :  { %240 = vmatpush3.bf16.msra.mxu0 %v264_v7 }
  0x1b   :  { %241 = vmatprep.subr.bf16.mxu0 %v298_v1 }
  0x1e   :  { %242 = vmatpush3.bf16.msra.mxu0 %v265_v8 }
  0x21   :  { %244 = vmatmul.mubr.bf16.vlgmr.msra.gmra.mrb[0].mxu0 %v18_v11 }
  0xf4   :  { %v117_v14 = vpop.f32.mrb[0].mxu0 }
  0xf5   :  { %v245_v15 = vpop.f32.mrb[1].mxu0  ;;  %v124_v17 = vmax.f32 %v117_v14, 0.0 }
  0xf6   :  { %v120_v16 = vpop.f32.mrb[2].mxu0 }
  0xf7   :  { %v125_v18 = vmax.f32 %v120_v16, 0.0  ;;  %v246_v19 = vpop.f32.mrb[3].mxu0 }
  0xf9   :  { %v126_v20 = vpack.c.bf16 %v125_v18, %v124_v17 }
  0xfb   :  { %250 = vmatmul.mubr.msk.bf16.vlgmr.msra.gmra.mrb[0].mxu1 %vm128_vm2, %v126_v20 }
 0x1ce   :  { %v170_v21 = vpop.f32.mrb[0].mxu1 }
 0x1cf   :  { %v177_v22 = vsub.f32 0.0, %v170_v21  ;;  %v251_v23 = vpop.f32.mrb[1].mxu1 }
 0x1d0   :  { %v173_v24 = vpop.f32.mrb[2].mxu1 }
 0x1d1   :  { %v179_v25 = vmul.f32 1.442695, %v177_v22  ;;  %v178_v26 = vsub.f32 0.0, %v173_v24  ;;  %v252_v27 = vpop.f32.mrb[3].mxu1 }
 0x1d3   :  { %266 = vpow2.f32 %v179_v25  ;;  %v181_v28 = vmul.f32 1.442695, %v178_v26 }
 0x1d5   :  { %268 = vpow2.f32 %v181_v28 }
 0x1dd   :  { %v267_v29 = vpop.eup %266 }
 0x1de   :  { %v183_v30 = vadd.f32 1.0, %v267_v29 }
 0x1df   :  { %v269_v31 = vpop.eup %268 }
 0x1e0   :  { %270 = vrcp.f32 %v183_v30  ;;  %v184_v32 = vadd.f32 1.0, %v269_v31 }
 0x1e2   :  { %272 = vrcp.f32 %v184_v32 }
 0x1ea   :  { %v271_v33 = vpop.eup %270 }
 0x1eb   :  { %v187_v34 = vmul.f32 %v271_v33, %v16_v9 }
 0x1ec   :  { %v273_v35 = vpop.eup %272 }
 0x1ed   :  { %v188_v36 = vmul.f32 %v273_v35, %v17_v10  ;;  %189 = vst [vmem:[#allocation2] sm:$0xff] %v187_v34 }
 0x1ef   :  { %190 = vst [vmem:[#allocation2 + $0x8] sm:$0xff] %v188_v36 }
 0x1f0   :  { %285 = shalt.err (!%p282_p4)
}
 0x1f1   :  { %s286_s9 = scalar_lea.hbm %s371_s3, 256 }
 0x1f2   :  { %p287_p5 = scmp.ne.s32.totalorder %s371_s3, %s286_s9  ;;  %p290_p6 = scmp.lt.u32.totalorder %s286_s9, %s371_s3 }
 0x1f4   :  { %p292_p7 = pnand %p290_p6, %p287_p5 }
 0x1f6   :  { %295 = shalt.err (!%p292_p7)
}
 0x1f7   :  { %s301_s14 = smov 128   ;;  %s302_s15 = smov 8  }
 0x1f8   :  { %202 = dma.vmem_to_hbm [thread:$0]  %s197_s1, 256, %s371_s3, [#allocation3], %s301_s14, %s301_s14, %s302_s15  }
 0x1f9   :  { %296 = dma.done.wait [#allocation3], 256  }
 0x1fa   :  { %297 = vsyncadd [#allocation3], 4294967040 }
 0x1fb   :  { %206 = vsyncpa [#allocation3], 1 }

</bundles_post_ra>
